<compile_context>
chip_gen: v7x
topology: tpu7x:2x2x1
jax: 0.10.0
libtpu: 0.0.40
codegen_flags: <defaults>
</compile_context>

<pallas_src>
import functools

import numpy as np
import jax
import jax.numpy as jnp
from jax.experimental import pallas as pl
from jax.experimental.pallas import tpu as pltpu


def _round_up(v, m):
    return ((v + m - 1) // m) * m


def _cdiv(a, b):
    return (a + b - 1) // b


def _balanced_tile(extent, tile_max, align, min_blocks=1):
    """Tile size <= tile_max, `align`-aligned, splitting `extent` into roughly
    equal blocks (minimizes dead padded rows/cols)."""
    extent_a = _round_up(max(int(extent), 1), align)
    n_blocks = max(min_blocks, _cdiv(extent_a, tile_max))
    tile = _round_up(_cdiv(extent_a, n_blocks), align)
    return min(tile, extent_a)


def linear_kernel(x_ref, w_ref, b_ref, o_ref, acc_ref):
    # x_ref: (tm, tk), w_ref: (tk, tn) pre-transposed (MXU-native RHS),
    # b_ref: (1, tn) f32, o_ref: (tm, tn), acc_ref: (tm, tn) f32 scratch.
    k = pl.program_id(2)

    # Bias folded into accumulator init -> finalize step is just cast + store.
    @pl.when(k == 0)
    def _():
        acc_ref[...] = jnp.broadcast_to(b_ref[...], acc_ref.shape)

    # K-loop body is MXU-only: bf16 (or f32) operands, f32 accumulation.
    acc_ref[...] += jnp.dot(
        x_ref[...], w_ref[...], preferred_element_type=jnp.float32
    )

    @pl.when(k == pl.num_programs(2) - 1)
    def _():
        o_ref[...] = acc_ref[...].astype(o_ref.dtype)


@functools.partial(
    jax.jit,
    static_argnames=("tm", "tn", "tk", "n_out", "out_dtype", "compute_dtype"),
)
def _linear_forward(x, w_p, b_p, *, tm, tn, tk, n_out, out_dtype, compute_dtype):
    B, K = x.shape
    Kp, Np = w_p.shape
    Mp = _round_up(B, tm)

    x_c = x.astype(compute_dtype)
    if (Mp, Kp) != (B, K):
        x_c = jnp.pad(x_c, ((0, Mp - B), (0, Kp - K)))

    grid = (Mp // tm, Np // tn, Kp // tk)

    # VMEM budget: double-buffered inputs/output + f32 accumulator scratch.
    in_b = np.dtype(compute_dtype).itemsize
    out_b = np.dtype(out_dtype).itemsize
    vmem_bytes = (
        2 * (tm * tk + tk * tn) * in_b + 2 * tn * 4
        + 2 * tm * tn * out_b + tm * tn * 4
    )
    compiler_kwargs = dict(dimension_semantics=("parallel", "parallel", "arbitrary"))
    if vmem_bytes > (12 << 20):
        # v5e's scoped default is only 16 MiB; stay well under v7x's 64 MiB physical.
        compiler_kwargs["vmem_limit_bytes"] = min(
            int(vmem_bytes * 1.25) + (2 << 20), 60 << 20
        )

    out = pl.pallas_call(
        linear_kernel,
        out_shape=jax.ShapeDtypeStruct((Mp, Np), out_dtype),
        grid_spec=pltpu.PrefetchScalarGridSpec(
            num_scalar_prefetch=0,
            grid=grid,
            in_specs=[
                pl.BlockSpec((tm, tk), lambda i, j, k: (i, k)),  # x tile
                pl.BlockSpec((tk, tn), lambda i, j, k: (k, j)),  # W^T tile
                pl.BlockSpec((1, tn), lambda i, j, k: (0, j)),   # bias tile
            ],
            out_specs=pl.BlockSpec((tm, tn), lambda i, j, k: (i, j)),
            scratch_shapes=[pltpu.VMEM((tm, tn), jnp.float32)],
        ),
        compiler_params=pltpu.CompilerParams(**compiler_kwargs),
    )(x_c, w_p, b_p)

    return out[:B, :n_out]


def make_linear_classifier(
    weight,
    bias,
    *,
    compute_dtype=jnp.bfloat16,
    out_dtype=None,
    tm_max=512,
    tn_max=512,
    tk_max=512,
):
    """Returns f(x) = x @ weight.T + bias (torch.nn.Linear forward).

    The weight relayout (transpose -> [K, N], cast to compute_dtype, padding to
    tile multiples) runs exactly once here, not per forward call.
    """
    N, K = weight.shape
    assert bias.shape == (N,)

    # >= 2 N-blocks when N allows so the v7x second TensorCore gets work even
    # when the whole batch fits in a single M tile (harmless on v5e/v6e).
    n_min_blocks = 2 if _round_up(N, 128) >= 256 else 1
    tn = _balanced_tile(N, tn_max, 128, min_blocks=n_min_blocks)
    tk = _balanced_tile(K, tk_max, 128)
    Np, Kp = _round_up(N, tn), _round_up(K, tk)

    # One-time relayout: [N, K] -> [Kp, Np] in compute dtype (MXU-native RHS).
    w_p = jnp.asarray(weight, compute_dtype).T
    if (Kp, Np) != (K, N):
        w_p = jnp.pad(w_p, ((0, Kp - K), (0, Np - N)))
    b_p = jnp.asarray(bias, jnp.float32)
    if Np != N:
        b_p = jnp.pad(b_p, (0, Np - N))
    b_p = b_p.reshape(1, Np)

    def forward(x):
        assert x.ndim == 2 and x.shape[1] == K
        # Balanced M tile: the whole (small) batch stays resident in one LHS
        # tile when it fits -> the weight streams from HBM exactly once.
        tm = _balanced_tile(x.shape[0], tm_max, 8)
        return _linear_forward(
            x, w_p, b_p,
            tm=tm, tn=tn, tk=tk, n_out=N,
            out_dtype=(out_dtype if out_dtype is not None else x.dtype),
            compute_dtype=compute_dtype,
        )

    return forward


def linear_classifier(x, weight, bias, **kwargs):
    """One-shot convenience wrapper (re-does the weight relayout each call)."""
    return make_linear_classifier(weight, bias, **kwargs)(x)


if __name__ == "__main__":
    key = jax.random.PRNGKey(0)

    # --- Test 1: the module's nominal small shape, f32 compute path ---------
    B, input_size, output_size = 8, 32, 16
    k1, k2, k3, key = jax.random.split(key, 4)
    x = jax.random.normal(k1, (B, input_size), dtype=jnp.float32)
    bound = 1.0 / jnp.sqrt(jnp.float32(input_size))
    weight = jax.random.uniform(
        k2, (output_size, input_size), minval=-bound, maxval=bound, dtype=jnp.float32
    )
    bias = jax.random.uniform(
        k3, (output_size,), minval=-bound, maxval=bound, dtype=jnp.float32
    )

    fwd = make_linear_classifier(weight, bias, compute_dtype=jnp.float32)
    out = jax.block_until_ready(fwd(x))
    ref = jnp.dot(x, weight.T, precision=jax.lax.Precision.HIGHEST) + bias
    assert out.shape == (B, output_size)
    assert out.dtype == x.dtype
    assert jnp.allclose(out, ref, atol=2e-2, rtol=2e-2), float(
        jnp.max(jnp.abs(out - ref))
    )

    # --- Test 2: multi-tile path (2 N-blocks, 2 K-steps), bf16 operands -----
    B2, K2, N2 = 300, 1024, 768
    k1, k2, k3, key = jax.random.split(key, 4)
    x2 = jax.random.normal(k1, (B2, K2), dtype=jnp.float32)
    w2 = jax.random.normal(k2, (N2, K2), dtype=jnp.float32) / jnp.sqrt(
        jnp.float32(K2)
    )
    b2 = jax.random.normal(k3, (N2,), dtype=jnp.float32)

    fwd2 = make_linear_classifier(w2, b2, compute_dtype=jnp.bfloat16)
    out2 = jax.block_until_ready(fwd2(x2))
    # Fair reference: identical bf16 input rounding, exact f32 accumulation.
    ref2 = (
        jnp.dot(
            x2.astype(jnp.bfloat16).astype(jnp.float32),
            w2.astype(jnp.bfloat16).astype(jnp.float32).T,
            precision=jax.lax.Precision.HIGHEST,
        )
        + b2
    )
    assert out2.shape == (B2, N2)
    assert jnp.allclose(out2, ref2, atol=1e-2, rtol=1e-2), float(
        jnp.max(jnp.abs(out2 - ref2))
    )

    print("KERNEL_OK")
</pallas_src>

<mosaic_0001>
module attributes {stable_mosaic.version = 11 : i64} {
  func.func @linear_kernel(%arg0: i32, %arg1: i32, %arg2: i32, %arg3: memref<8x128xf32, #tpu.memory_space<vmem>>, %arg4: memref<128x128xf32, #tpu.memory_space<vmem>>, %arg5: memref<1x128xf32, #tpu.memory_space<vmem>>, %arg6: memref<8x128xf32, #tpu.memory_space<vmem>>, %arg7: memref<8x128xf32, #tpu.memory_space<vmem>>) attributes {dimension_semantics = [#tpu.dimension_semantics<parallel>, #tpu.dimension_semantics<parallel>, #tpu.dimension_semantics<arbitrary>], iteration_bounds = array<i64: 1, 1, 1>, scalar_prefetch = 0 : i64, scratch_operands = 1 : i64, tpu.core_type = #tpu.core_type<tc>, window_params = [{transform_indices = @transform_0, window_bounds = array<i64: 8, 128>}, {transform_indices = @transform_1, window_bounds = array<i64: 128, 128>}, {transform_indices = @transform_2, window_bounds = array<i64: 1, 128>}, {transform_indices = @transform_3, window_bounds = array<i64: 8, 128>}]} {
    %c0_i32 = arith.constant 0 : i32
    %0 = arith.cmpi eq, %arg2, %c0_i32 : i32
    %1 = arith.extui %0 : i1 to i32
    %c0_i32_0 = arith.constant 0 : i32
    %2 = arith.cmpi ne, %1, %c0_i32_0 : i32
    scf.if %2 {
      %c0_10 = arith.constant 0 : index
      %c0_11 = arith.constant 0 : index
      %12 = vector.load %arg5[%c0_10, %c0_11] : memref<1x128xf32, #tpu.memory_space<vmem>>, vector<1x128xf32>
      %13 = vector.shape_cast %12 : vector<1x128xf32> to vector<1x128xf32>
      %14 = vector.broadcast %13 : vector<1x128xf32> to vector<8x128xf32>
      %c0_12 = arith.constant 0 : index
      %c0_13 = arith.constant 0 : index
      %15 = vector.load %arg7[%c0_12, %c0_13] : memref<8x128xf32, #tpu.memory_space<vmem>>, vector<8x128xf32>
      tpu.vector_store %arg7[%c0_12, %c0_13], %14 {strides = array<i32>} : memref<8x128xf32, #tpu.memory_space<vmem>>, vector<8x128xf32>,
    } else {
    }
    %c0 = arith.constant 0 : index
    %c0_1 = arith.constant 0 : index
    %3 = vector.load %arg7[%c0, %c0_1] : memref<8x128xf32, #tpu.memory_space<vmem>>, vector<8x128xf32>
    %c0_2 = arith.constant 0 : index
    %c0_3 = arith.constant 0 : index
    %4 = vector.load %arg3[%c0_2, %c0_3] : memref<8x128xf32, #tpu.memory_space<vmem>>, vector<8x128xf32>
    %c0_4 = arith.constant 0 : index
    %c0_5 = arith.constant 0 : index
    %5 = vector.load %arg4[%c0_4, %c0_5] : memref<128x128xf32, #tpu.memory_space<vmem>>, vector<128x128xf32>
    %cst = arith.constant dense<0.000000e+00> : vector<8x128xf32>
    %6 = tpu.matmul %4, %5, %cst {dimension_numbers = #tpu.dot_dimension_numbers<[1], [0], [0], [1], [0, 0, 1, 1], [], []>} : vector<8x128xf32>, vector<128x128xf32>, vector<8x128xf32> -> vector<8x128xf32>
    %7 = arith.addf %3, %6 : vector<8x128xf32>
    %c0_6 = arith.constant 0 : index
    %c0_7 = arith.constant 0 : index
    %8 = vector.load %arg7[%c0_6, %c0_7] : memref<8x128xf32, #tpu.memory_space<vmem>>, vector<8x128xf32>
    tpu.vector_store %arg7[%c0_6, %c0_7], %7 {strides = array<i32>} : memref<8x128xf32, #tpu.memory_space<vmem>>, vector<8x128xf32>,
    %c0_i32_8 = arith.constant 0 : i32
    %9 = arith.cmpi eq, %arg2, %c0_i32_8 : i32
    %10 = arith.extui %9 : i1 to i32
    %c0_i32_9 = arith.constant 0 : i32
    %11 = arith.cmpi ne, %10, %c0_i32_9 : i32
    scf.if %11 {
      %c0_10 = arith.constant 0 : index
      %c0_11 = arith.constant 0 : index
      %12 = vector.load %arg7[%c0_10, %c0_11] : memref<8x128xf32, #tpu.memory_space<vmem>>, vector<8x128xf32>
      %c0_12 = arith.constant 0 : index
      %c0_13 = arith.constant 0 : index
      %13 = vector.load %arg6[%c0_12, %c0_13] : memref<8x128xf32, #tpu.memory_space<vmem>>, vector<8x128xf32>
      tpu.vector_store %arg6[%c0_12, %c0_13], %12 {strides = array<i32>} : memref<8x128xf32, #tpu.memory_space<vmem>>, vector<8x128xf32>,
    } else {
    }
    return
  }
  func.func @transform_0(%arg0: i32, %arg1: i32, %arg2: i32) -> (i32, i32) {
    %c0_i32 = arith.constant 0 : i32
    return %arg0, %arg2 : i32, i32
  }
  func.func @transform_1(%arg0: i32, %arg1: i32, %arg2: i32) -> (i32, i32) {
    %c0_i32 = arith.constant 0 : i32
    return %arg2, %arg1 : i32, i32
  }
  func.func @transform_2(%arg0: i32, %arg1: i32, %arg2: i32) -> (i32, i32) {
    %c0_i32 = arith.constant 0 : i32
    %c0_i32_0 = arith.constant 0 : i32
    return %c0_i32, %arg1 : i32, i32
  }
  func.func @transform_3(%arg0: i32, %arg1: i32, %arg2: i32) -> (i32, i32) {
    %c0_i32 = arith.constant 0 : i32
    return %arg0, %arg1 : i32, i32
  }
}

</mosaic_0001>

<bundles_post_ra>
// kernel: _linear_forward.1
= control target key start
LH: loop header
LB: loop body
LE: loop exit
PB: predicated region body
PF: predicated region fallthrough
CT: control target
= control target key end

     0   :  { %8 = vsyncpa [#allocation4], 0  ;;  %s340_s0 = inlined_call_operand.vmem [shape: f32[8,128], index: 0, kind: input, shape index: {}]   ;;  %s341_s1 = inlined_call_operand.hbm [shape: f32[128,128], index: 1, kind: input, shape index: {}]   ;;  %s342_s2 = inlined_call_operand.vmem [shape: f32[1,128], index: 2, kind: input, shape index: {}]   ;;  %s343_s3 = inlined_call_operand.hbm [shape: f32[8,128], index: 3, kind: output, shape index: {}]  }
   0x1   :  { %9 = vsyncpa [#allocation5], 0  ;;  %s283_s12 = smov [#allocation3]   ;;  %s235_s16 = scalar_lea.hbm %s341_s1, 2048 }
   0x2   :  { %s17_s13 = sshll.u32 %s283_s12, 4  ;;  %p236_p0 = scmp.ne.s32.totalorder %s341_s1, %s235_s16  ;;  %s18_s13 = int_to_ptr.vmem [resolvable:$true] %s17_s13 }
   0x3   :  { %p239_p1 = scmp.lt.u32.totalorder %s235_s16, %s341_s1 }
   0x5   :  { %p241_p2 = pnand %p239_p1, %p236_p0 }
   0x7   :  { %244 = shalt.err (!%p241_p2)
}
   0x8   :  { %s245_s21 = scalar_lea.vmem %s18_s13, 2048  ;;  %p250_p4 = scmp.lt.s32.totalorder %s18_s13, %s18_s13 }
   0x9   :  { %p246_p3 = scmp.ne.s32.totalorder %s18_s13, %s245_s21  ;;  %p251_p5 = scmp.lt.s32.totalorder %s245_s21, %s245_s21 }
   0xb   :  { %p252_p6 = por %p251_p5, %p250_p4 }
   0xd   :  { %p253_p7 = pnand %p252_p6, %p246_p3 }
   0xf   :  { %256 = shalt.err (!%p253_p7)
}
  0x10   :  { %s284_s22 = smov 128   ;;  %s285_s23 = smov 8  }
  0x11   :  { %23 = dma.hbm_to_vmem [thread:$0]  %s341_s1, 2048, %s18_s13, [#allocation4], %s284_s22, %s284_s22, %s285_s23  }
  0x12   :  { %279 = dma.done.wait [#allocation4], 2048  }
  0x13   :  { %280 = vsyncadd [#allocation4], 4294965248  ;;  %v286_v0 = vmov 0.0|0.0   ;;  %vm287_vm0 = vmmov 0   ;;  %v288_v1 = vmov 0.0   ;;  %v43_v2 = vld [vmem:[#allocation3] sm:$0xff] }
  0x14   :  { %204 = vmatprep.subr.bf16.mxu0 %v286_v0  ;;  %201 = vmatprep.mubr.msk.f32.mxu0 %vm287_vm0, %v288_v1  ;;  %v44_v3 = vld [vmem:[#allocation3 + $0x8] sm:$0xff]  ;;  %v45_v4 = vld [vmem:[#allocation3 + $0x10] sm:$0xff]  ;;  %v46_v6 = vld [vmem:[#allocation3 + $0x18] sm:$0xff]  ;;  %s289_s29 = smov [#allocation6]  }
  0x15   :  { %v205_v5 = vpack.c.bf16 %v44_v3, %v43_v2  ;;  %v208_v7 = vpack.c.bf16 %v46_v6, %v45_v4  ;;  %v47_v8 = vld [vmem:[#allocation3 + $0x20] sm:$0xff]  ;;  %v48_v9 = vld [vmem:[#allocation3 + $0x28] sm:$0xff]  ;;  %v49_v11 = vld [vmem:[#allocation3 + $0x30] sm:$0xff]  ;;  %s142_s30 = sshll.u32 %s289_s29, 4  ;;  %s143_s30 = int_to_ptr.vmem [resolvable:$true] %s142_s30 }
  0x16   :  { %v211_v10 = vpack.c.bf16 %v48_v9, %v47_v8  ;;  %v50_v12 = vld [vmem:[#allocation3 + $0x38] sm:$0xff]  ;;  %v51_v14 = vld [vmem:[#allocation3 + $0x40] sm:$0xff]  ;;  %v52_v15 = vld [vmem:[#allocation3 + $0x48] sm:$0xff]  ;;  %s257_s4 = scalar_lea.vmem %s143_s30, 128  ;;  %p262_p9 = scmp.lt.s32.totalorder %s143_s30, %s143_s30 }
  0x17   :  { %206 = vmatpush3.bf16.msra.mxu0 %v205_v5  ;;  %v214_v13 = vpack.c.bf16 %v50_v12, %v49_v11  ;;  %v217_v16 = vpack.c.bf16 %v52_v15, %v51_v14  ;;  %v53_v17 = vld [vmem:[#allocation3 + $0x50] sm:$0xff]  ;;  %v54_v18 = vld [vmem:[#allocation3 + $0x58] sm:$0xff]  ;;  %v55_v20 = vld [vmem:[#allocation3 + $0x60] sm:$0xff]  ;;  %p258_p8 = scmp.ne.s32.totalorder %s143_s30, %s257_s4  ;;  %p263_p10 = scmp.lt.s32.totalorder %s257_s4, %s257_s4 }
  0x18   :  { %207 = vmatprep.subr.bf16.mxu0 %v286_v0  ;;  %v220_v19 = vpack.c.bf16 %v54_v18, %v53_v17  ;;  %v56_v21 = vld [vmem:[#allocation3 + $0x68] sm:$0xff]  ;;  %v57_v23 = vld [vmem:[#allocation3 + $0x70] sm:$0xff]  ;;  %v58_v24 = vld [vmem:[#allocation3 + $0x78] sm:$0xff] }
  0x19   :  { %v223_v22 = vpack.c.bf16 %v56_v21, %v55_v20  ;;  %v226_v25 = vpack.c.bf16 %v58_v24, %v57_v23  ;;  %v42_v26 = vld [vmem:[%s340_s0] sm:$0xff]  ;;  %p264_p11 = por %p263_p10, %p262_p9 }
  0x1a   :  { %v151_v27 = vld [vmem:[%s342_s2] ss:$0 sm:$0xff] }
  0x1b   :  { %209 = vmatpush3.bf16.msra.mxu0 %v208_v7  ;;  %p265_p12 = pnand %p264_p11, %p258_p8 }
  0x1c   :  { %210 = vmatprep.subr.bf16.mxu0 %v286_v0 }
  0x1f   :  { %212 = vmatpush3.bf16.msra.mxu0 %v211_v10 }
  0x20   :  { %213 = vmatprep.subr.bf16.mxu0 %v286_v0 }
  0x23   :  { %215 = vmatpush3.bf16.msra.mxu0 %v214_v13 }
  0x24   :  { %216 = vmatprep.subr.bf16.mxu0 %v286_v0 }
  0x27   :  { %218 = vmatpush3.bf16.msra.mxu0 %v217_v16 }
  0x28   :  { %219 = vmatprep.subr.bf16.mxu0 %v286_v0 }
  0x2b   :  { %221 = vmatpush3.bf16.msra.mxu0 %v220_v19 }
  0x2c   :  { %222 = vmatprep.subr.bf16.mxu0 %v286_v0 }
  0x2f   :  { %224 = vmatpush3.bf16.msra.mxu0 %v223_v22 }
  0x30   :  { %225 = vmatprep.subr.bf16.mxu0 %v286_v0 }
  0x33   :  { %227 = vmatpush3.bf16.msra.mxu0 %v226_v25 }
  0x36   :  { %202 = vmatmul.mubr.f32.vlgmr.msra.gmra.mrb[0].mxu0 %v42_v26 }
 0x109   :  { %v125_v28 = vpop.f32.mrb[0].mxu0 }
 0x10a   :  { %v129_v29 = vadd.f32 %v151_v27, %v125_v28  ;;  %v203_v30 = vpop.f32.mrb[1].mxu0 }
 0x10c   :  { %135 = vst [vmem:[#allocation6] sm:$0xff] %v129_v29 }
 0x10d   :  { %268 = shalt.err (!%p265_p12)
}
 0x10e   :  { %s269_s6 = scalar_lea.hbm %s343_s3, 128 }
 0x10f   :  { %p270_p13 = scmp.ne.s32.totalorder %s343_s3, %s269_s6  ;;  %p273_p0 = scmp.lt.u32.totalorder %s269_s6, %s343_s3 }
 0x111   :  { %p275_p1 = pnand %p273_p0, %p270_p13 }
 0x113   :  { %278 = shalt.err (!%p275_p1)
}
 0x114   :  { %145 = dma.vmem_to_hbm [thread:$0]  %s143_s30, 128, %s343_s3, [#allocation5]  }
 0x115   :  { %281 = dma.done.wait [#allocation5], 128  }
 0x116   :  { %282 = vsyncadd [#allocation5], 4294967168 }
 0x117   :  { %149 = vsyncpa [#allocation4], 1 }
 0x118   :  { %150 = vsyncpa [#allocation5], 1 }

</bundles_post_ra>
